<compile_context>
chip_gen: v7x
topology: tpu7x:2x2x1
jax: 0.10.0
libtpu: 0.0.40
codegen_flags: <defaults>
</compile_context>

<pallas_src>
import functools

import numpy as np

import jax
import jax.numpy as jnp
from jax import lax
from jax.experimental import pallas as pl
from jax.experimental.pallas import tpu as pltpu


def _round_up(x, m):
    return (x + m - 1) // m * m


def _gru_chunk_kernel(h0_ref, gi_ref, whh_ref, bias_ref, bhn_ref,
                      out_ref, hn_ref, h_scratch,
                      *, seq_len, unroll, matmul_dtype):
    """One grid step == one (batch block, time chunk) tile: TS GRU time steps.

    h0_ref   : (1, NB, Hp)    f32   initial hidden state (padded)
    gi_ref   : (TS, NB, 3*Hp) bf16  precomputed x@W_ih^T, gate layout [r|z|n]
    whh_ref  : (Hp, 3*Hp)     bf16  hidden->gates weight (transposed, gate-padded)
    bias_ref : (1, 3*Hp)      f32   folded biases: [b_ir+b_hr | b_iz+b_hz | b_in]
    bhn_ref  : (1, Hp)        f32   b_hn (must remain inside the r*(...) term)
    out_ref  : (TS, NB, Hp)   bf16  per-step hidden states
    hn_ref   : (NB, Hp)       f32   final hidden state (written from the f32 carry)
    h_scratch: (NB, Hp)       f32   hidden-state carry across time chunks
    """
    NB, Hp = h_scratch.shape
    TS = out_ref.shape[0]
    t0 = pl.program_id(1) * TS          # global time offset of this chunk

    @pl.when(pl.program_id(1) == 0)
    def _():
        h_scratch[...] = h0_ref[0]

    # Hoisted broadcasts (JAX does not CSE broadcast_in_dim inside the loop).
    bias = jnp.broadcast_to(bias_ref[...], (NB, 3 * Hp))   # f32
    bhn = jnp.broadcast_to(bhn_ref[...], (NB, Hp))         # f32

    def step(s, h):
        gi = gi_ref[s].astype(jnp.float32) + bias                      # (NB, 3Hp)
        gh = jnp.dot(h.astype(matmul_dtype), whh_ref[...],
                     preferred_element_type=jnp.float32)               # (NB, 3Hp)
        # Gate slices at multiples of Hp (128-aligned) -> zero-cost views.
        r = jax.nn.sigmoid(gi[:, 0 * Hp:1 * Hp] + gh[:, 0 * Hp:1 * Hp])
        z = jax.nn.sigmoid(gi[:, 1 * Hp:2 * Hp] + gh[:, 1 * Hp:2 * Hp])
        n = jnp.tanh(gi[:, 2 * Hp:3 * Hp] + r * (gh[:, 2 * Hp:3 * Hp] + bhn))
        h_new = (1.0 - z) * n + z * h
        out_ref[s] = h_new.astype(out_ref.dtype)
        # Freeze the carry on padded time steps (t >= T) so hn == h_{T-1}.
        keep = ((t0 + s) < seq_len).astype(jnp.float32)                # scalar 0/1
        return h + keep * (h_new - h)

    h_scratch[...] = lax.fori_loop(0, TS, step, h_scratch[...], unroll=unroll)
    # Output block index is constant along the time axis -> resident accumulator;
    # only the final value is written back to HBM.
    hn_ref[...] = h_scratch[...]


def encoder_rnn_forward(input_seq, w_ih, w_hh, b_ih, b_hh, hidden=None,
                        *, time_chunk=32, batch_block=None, unroll=4,
                        matmul_dtype=jnp.bfloat16, stream_dtype=jnp.bfloat16):
    """Mirrors EncoderRNN.forward (single-layer GRU, PyTorch gate order [r,z,n]).

    input_seq : (T, N, D) or (T, D) (batch dim of 1 inserted, like torch.unsqueeze).
    hidden    : optional (1, N, H); zeros if None (EncoderRNN.initHidden).
    w_ih (3H, D), w_hh (3H, H), b_ih (3H,), b_hh (3H,) -- PyTorch GRU param shapes.
    Returns (output (T, N, H) bf16, hidden (1, N, H) f32).
    """
    if input_seq.ndim == 2:
        input_seq = input_seq[:, None, :]
    T, N, D = input_seq.shape
    H = w_hh.shape[1]
    f32 = jnp.float32

    Hp = _round_up(H, 128)              # lane-dense, 128-aligned gate segments
    Np = _round_up(N, 16)               # bf16 LHS packs (16,128) per vreg
    if batch_block is None:
        NB = Np                         # one batch block (v5e/v6e default)
    else:
        NB = min(_round_up(batch_block, 16), Np)
        Np = _round_up(Np, NB)
    n_nb = Np // NB

    TS = max(1, min(time_chunk, T))     # time steps per grid point
    Tp = _round_up(T, TS)
    n_chunks = Tp // TS

    x = jnp.asarray(input_seq, f32)
    w_ih = jnp.asarray(w_ih, f32)
    w_hh = jnp.asarray(w_hh, f32)
    b_ih = jnp.asarray(b_ih, f32)
    b_hh = jnp.asarray(b_hh, f32)

    # ---- W_ih^T in the final padded gate layout (D, 3*Hp): each gate gets its
    # own zero-padded Hp-wide segment, so the hoisted matmul emits gi directly
    # in kernel layout (no pad/relayout pass over the big gi tensor).
    w_ih_t = jnp.pad(w_ih.T.reshape(D, 3, H),
                     ((0, 0), (0, 0), (0, Hp - H))).reshape(D, 3 * Hp)

    # Pad x (cheap: D lanes) instead of gi; zero rows/cols -> zero padded gi.
    x_p = jnp.pad(x, ((0, Tp - T), (0, Np - N), (0, 0)))
    gi = jnp.dot(x_p.reshape(Tp * Np, D).astype(matmul_dtype),
                 w_ih_t.astype(matmul_dtype),
                 preferred_element_type=f32).astype(stream_dtype)
    gi = gi.reshape(Tp, Np, 3 * Hp)                                   # bf16 stream

    # Folded biases: r,z get b_ih+b_hh; n gets b_in only here -- b_hn must stay
    # inside the r*(...) term (PyTorch GRU semantics), so it is passed separately.
    b_rzn = jnp.concatenate([b_ih[:2 * H] + b_hh[:2 * H], b_ih[2 * H:]])
    b_rzn = jnp.pad(b_rzn.reshape(3, H), ((0, 0), (0, Hp - H))).reshape(1, 3 * Hp)
    b_hn = jnp.pad(b_hh[2 * H:], (0, Hp - H))[None, :]                # (1, Hp)

    w_hh_t = jnp.pad(w_hh.T.reshape(H, 3, H),
                     ((0, Hp - H), (0, 0), (0, Hp - H)))
    w_hh_t = w_hh_t.reshape(Hp, 3 * Hp).astype(matmul_dtype)          # (Hp, 3Hp)

    if hidden is None:
        hidden = jnp.zeros((1, N, H), f32)                            # initHidden
    h0 = jnp.pad(jnp.asarray(hidden, f32),
                 ((0, 0), (0, Np - N), (0, Hp - H)))                  # (1, Np, Hp)

    # ---- VMEM budget derived from block sizes (double-buffered inputs/outputs),
    # capped so the same configuration is safe under v7x's 64 MiB VMEM.
    sz_s = np.dtype(stream_dtype).itemsize
    sz_m = np.dtype(matmul_dtype).itemsize
    vmem_bytes = (2 * TS * NB * 3 * Hp * sz_s        # gi blocks
                  + 2 * TS * NB * Hp * sz_s          # out blocks
                  + 2 * NB * Hp * 4                  # h0 block
                  + 2 * Hp * 3 * Hp * sz_m           # w_hh^T
                  + 2 * 8 * 4 * Hp * 4 * 2           # biases (sublane-padded)
                  + 2 * NB * Hp * 4                  # hn block
                  + NB * Hp * 4)                     # h_scratch
    vmem_limit = int(min(max(2 * vmem_bytes, 16 * 1024 * 1024), 48 * 1024 * 1024))

    kernel = functools.partial(_gru_chunk_kernel, seq_len=T,
                               unroll=max(1, min(unroll, TS)),
                               matmul_dtype=matmul_dtype)

    out_p, hn_p = pl.pallas_call(
        kernel,
        out_shape=(jax.ShapeDtypeStruct((Tp, Np, Hp), stream_dtype),
                   jax.ShapeDtypeStruct((Np, Hp), f32)),
        grid_spec=pltpu.PrefetchScalarGridSpec(
            num_scalar_prefetch=0,
            grid=(n_nb, n_chunks),                   # batch blocks x time chunks
            in_specs=[
                pl.BlockSpec((1, NB, Hp), lambda b, i: (0, b, 0)),        # h0
                pl.BlockSpec((TS, NB, 3 * Hp), lambda b, i: (i, b, 0)),   # gi chunk
                pl.BlockSpec((Hp, 3 * Hp), lambda b, i: (0, 0)),          # w_hh^T
                pl.BlockSpec((1, 3 * Hp), lambda b, i: (0, 0)),           # folded biases
                pl.BlockSpec((1, Hp), lambda b, i: (0, 0)),               # b_hn
            ],
            out_specs=(
                pl.BlockSpec((TS, NB, Hp), lambda b, i: (i, b, 0)),       # out
                pl.BlockSpec((NB, Hp), lambda b, i: (b, 0)),              # final hidden
            ),
            scratch_shapes=[pltpu.VMEM((NB, Hp), f32)],
        ),
        compiler_params=pltpu.CompilerParams(
            # batch blocks are independent (megacore on v7x); the time axis is a
            # true recurrence and must stay sequential.
            dimension_semantics=("parallel", "arbitrary"),
            vmem_limit_bytes=vmem_limit,
        ),
    )(h0, gi, w_hh_t, b_rzn, b_hn)

    out = out_p[:T, :N, :H]                 # bf16 per-step hidden states
    hn = hn_p[None, :N, :H]                 # f32 final hidden, shape (1, N, H)
    return out, hn


def _gru_reference(input_seq, w_ih, w_hh, b_ih, b_hh, hidden):
    """Pure-JAX f32 reference (PyTorch GRU equations) for a correctness check."""
    H = w_hh.shape[1]

    def step(h, x):
        gi = x @ w_ih.T + b_ih
        gh = h @ w_hh.T + b_hh
        r = jax.nn.sigmoid(gi[:, :H] + gh[:, :H])
        z = jax.nn.sigmoid(gi[:, H:2 * H] + gh[:, H:2 * H])
        n = jnp.tanh(gi[:, 2 * H:] + r * gh[:, 2 * H:])
        h_new = (1.0 - z) * n + z * h
        return h_new, h_new

    h_last, ys = lax.scan(step, hidden[0], input_seq)
    return ys, h_last[None]


if __name__ == "__main__":
    # Small shapes consistent with EncoderRNN(input_size=D, hidden_size=H, seq_len=T)
    T, N, D, H = 8, 2, 16, 32

    key = jax.random.PRNGKey(0)
    k_x, k_wih, k_whh, k_bih, k_bhh = jax.random.split(key, 5)

    # Deterministic parameter init (PyTorch-style uniform(-1/sqrt(H), 1/sqrt(H)))
    bound = 1.0 / jnp.sqrt(jnp.float32(H))
    w_ih = jax.random.uniform(k_wih, (3 * H, D), jnp.float32, -bound, bound)
    w_hh = jax.random.uniform(k_whh, (3 * H, H), jnp.float32, -bound, bound)
    b_ih = jax.random.uniform(k_bih, (3 * H,), jnp.float32, -bound, bound)
    b_hh = jax.random.uniform(k_bhh, (3 * H,), jnp.float32, -bound, bound)

    input_seq = jax.random.normal(k_x, (T, N, D), jnp.float32)

    # time_chunk=3 -> Tp=9, 3 chunks: exercises the cross-chunk hidden carry AND
    # the padded-time-step freeze used for the exact final-hidden output.
    fwd = jax.jit(functools.partial(encoder_rnn_forward, w_ih=w_ih, w_hh=w_hh,
                                    b_ih=b_ih, b_hh=b_hh, time_chunk=3))
    output, hidden = fwd(input_seq)
    output = jax.block_until_ready(output)
    hidden = jax.block_until_ready(hidden)

    assert output.shape == (T, N, H)
    assert hidden.shape == (1, N, H)
    assert output.dtype == jnp.bfloat16      # bf16 output stream (per perf review)
    assert hidden.dtype == jnp.float32       # final hidden kept in f32

    # Sanity check against a pure-JAX f32 scan reference.  Tolerance loosened
    # because matmul operands and the gi/out streams are bf16 (f32 gate math).
    h0 = jnp.zeros((1, N, H), jnp.float32)
    ref_out, ref_hid = _gru_reference(input_seq, w_ih, w_hh, b_ih, b_hh, h0)
    assert jnp.allclose(output.astype(jnp.float32), ref_out, atol=2e-2, rtol=2e-2)
    assert jnp.allclose(hidden, ref_hid, atol=2e-2, rtol=2e-2)

    print("KERNEL_OK")
</pallas_src>

<mosaic_0001>
module attributes {stable_mosaic.version = 11 : i64} {
  func.func @_gru_chunk_kernel(%arg0: i32, %arg1: i32, %arg2: memref<1x16x128xf32, #tpu.memory_space<vmem>>, %arg3: memref<3x16x384xbf16, #tpu.memory_space<vmem>>, %arg4: memref<128x384xbf16, #tpu.memory_space<vmem>>, %arg5: memref<1x384xf32, #tpu.memory_space<vmem>>, %arg6: memref<1x128xf32, #tpu.memory_space<vmem>>, %arg7: memref<3x16x128xbf16, #tpu.memory_space<vmem>>, %arg8: memref<16x128xf32, #tpu.memory_space<vmem>>, %arg9: memref<16x128xf32, #tpu.memory_space<vmem>>) attributes {dimension_semantics = [#tpu.dimension_semantics<parallel>, #tpu.dimension_semantics<arbitrary>], iteration_bounds = array<i64: 1, 3>, scalar_prefetch = 0 : i64, scratch_operands = 1 : i64, tpu.core_type = #tpu.core_type<tc>, window_params = [{transform_indices = @transform_0, window_bounds = array<i64: 1, 16, 128>}, {transform_indices = @transform_1, window_bounds = array<i64: 3, 16, 384>}, {pipeline_mode = #tpu.pipeline_mode<synchronous>, transform_indices = @transform_2, window_bounds = array<i64: 128, 384>}, {pipeline_mode = #tpu.pipeline_mode<synchronous>, transform_indices = @transform_3, window_bounds = array<i64: 1, 384>}, {pipeline_mode = #tpu.pipeline_mode<synchronous>, transform_indices = @transform_4, window_bounds = array<i64: 1, 128>}, {transform_indices = @transform_5, window_bounds = array<i64: 3, 16, 128>}, {transform_indices = @transform_6, window_bounds = array<i64: 16, 128>}]} {
    %c3_i32 = arith.constant 3 : i32
    %0 = arith.muli %arg1, %c3_i32 : i32
    %c0_i32 = arith.constant 0 : i32
    %1 = arith.cmpi eq, %arg1, %c0_i32 : i32
    %2 = arith.extui %1 : i1 to i32
    %c0_i32_0 = arith.constant 0 : i32
    %3 = arith.cmpi ne, %2, %c0_i32_0 : i32
    scf.if %3 {
      %c0_45 = arith.constant 0 : index
      %c0_46 = arith.constant 0 : index
      %c0_47 = arith.constant 0 : index
      %158 = vector.load %arg2[%c0_45, %c0_46, %c0_47] : memref<1x16x128xf32, #tpu.memory_space<vmem>>, vector<1x16x128xf32>
      %159 = vector.shape_cast %158 : vector<1x16x128xf32> to vector<16x128xf32>
      %c0_48 = arith.constant 0 : index
      %c0_49 = arith.constant 0 : index
      %160 = vector.load %arg9[%c0_48, %c0_49] : memref<16x128xf32, #tpu.memory_space<vmem>>, vector<16x128xf32>
      tpu.vector_store %arg9[%c0_48, %c0_49], %159 {strides = array<i32>} : memref<16x128xf32, #tpu.memory_space<vmem>>, vector<16x128xf32>,
    } else {
    }
    %c0 = arith.constant 0 : index
    %c0_1 = arith.constant 0 : index
    %4 = vector.load %arg5[%c0, %c0_1] : memref<1x384xf32, #tpu.memory_space<vmem>>, vector<1x384xf32>
    %5 = vector.shape_cast %4 : vector<1x384xf32> to vector<1x384xf32>
    %6 = vector.broadcast %5 : vector<1x384xf32> to vector<16x384xf32>
    %c0_2 = arith.constant 0 : index
    %c0_3 = arith.constant 0 : index
    %7 = vector.load %arg6[%c0_2, %c0_3] : memref<1x128xf32, #tpu.memory_space<vmem>>, vector<1x128xf32>
    %8 = vector.shape_cast %7 : vector<1x128xf32> to vector<1x128xf32>
    %9 = vector.broadcast %8 : vector<1x128xf32> to vector<16x128xf32>
    %c0_4 = arith.constant 0 : index
    %c0_5 = arith.constant 0 : index
    %10 = vector.load %arg9[%c0_4, %c0_5] : memref<16x128xf32, #tpu.memory_space<vmem>>, vector<16x128xf32>
    %c0_i32_6 = arith.constant 0 : i32
    %11 = arith.index_cast %c0_i32_6 : i32 to index
    %c0_7 = arith.constant 0 : index
    %c0_8 = arith.constant 0 : index
    %12 = vector.load %arg3[%11, %c0_7, %c0_8] : memref<3x16x384xbf16, #tpu.memory_space<vmem>>, vector<1x16x384xbf16>
    %13 = vector.shape_cast %12 : vector<1x16x384xbf16> to vector<16x384xbf16>
    %14 = arith.extf %13 : vector<16x384xbf16> to vector<16x384xf32>
    %15 = arith.addf %14, %6 : vector<16x384xf32>
    %16 = arith.truncf %10 : vector<16x128xf32> to vector<16x128xbf16>
    %c0_9 = arith.constant 0 : index
    %c0_10 = arith.constant 0 : index
    %17 = vector.load %arg4[%c0_9, %c0_10] : memref<128x384xbf16, #tpu.memory_space<vmem>>, vector<128x384xbf16>
    %cst = arith.constant dense<0.000000e+00> : vector<16x384xf32>
    %18 = tpu.matmul %16, %17, %cst {dimension_numbers = #tpu.dot_dimension_numbers<[1], [0], [0], [1], [0, 0, 1, 1], [], []>} : vector<16x128xbf16>, vector<128x384xbf16>, vector<16x384xf32> -> vector<16x384xf32>
    %19 = vector.extract_strided_slice %15 {offsets = [0, 0], sizes = [16, 128], strides = [1, 1]} : vector<16x384xf32> to vector<16x128xf32>
    %20 = vector.extract_strided_slice %18 {offsets = [0, 0], sizes = [16, 128], strides = [1, 1]} : vector<16x384xf32> to vector<16x128xf32>
    %21 = arith.addf %19, %20 : vector<16x128xf32>
    %22 = arith.negf %21 : vector<16x128xf32>
    %23 = math.exp %22 : vector<16x128xf32>
    %cst_11 = arith.constant 1.000000e+00 : f32
    %24 = vector.broadcast %cst_11 : f32 to vector<16x128xf32>
    %25 = arith.addf %24, %23 : vector<16x128xf32>
    %26 = arith.divf %24, %25 : vector<16x128xf32>
    %27 = vector.extract_strided_slice %15 {offsets = [0, 128], sizes = [16, 128], strides = [1, 1]} : vector<16x384xf32> to vector<16x128xf32>
    %28 = vector.extract_strided_slice %18 {offsets = [0, 128], sizes = [16, 128], strides = [1, 1]} : vector<16x384xf32> to vector<16x128xf32>
    %29 = arith.addf %27, %28 : vector<16x128xf32>
    %30 = arith.negf %29 : vector<16x128xf32>
    %31 = math.exp %30 : vector<16x128xf32>
    %cst_12 = arith.constant 1.000000e+00 : f32
    %32 = vector.broadcast %cst_12 : f32 to vector<16x128xf32>
    %33 = arith.addf %32, %31 : vector<16x128xf32>
    %34 = arith.divf %32, %33 : vector<16x128xf32>
    %35 = vector.extract_strided_slice %15 {offsets = [0, 256], sizes = [16, 128], strides = [1, 1]} : vector<16x384xf32> to vector<16x128xf32>
    %36 = vector.extract_strided_slice %18 {offsets = [0, 256], sizes = [16, 128], strides = [1, 1]} : vector<16x384xf32> to vector<16x128xf32>
    %37 = arith.addf %36, %9 : vector<16x128xf32>
    %38 = arith.mulf %26, %37 : vector<16x128xf32>
    %39 = arith.addf %35, %38 : vector<16x128xf32>
    %40 = math.tanh %39 : vector<16x128xf32>
    %cst_13 = arith.constant 1.000000e+00 : f32
    %41 = vector.broadcast %cst_13 : f32 to vector<16x128xf32>
    %42 = arith.subf %41, %34 : vector<16x128xf32>
    %43 = arith.mulf %42, %40 : vector<16x128xf32>
    %44 = arith.mulf %34, %10 : vector<16x128xf32>
    %45 = arith.addf %43, %44 : vector<16x128xf32>
    %46 = arith.truncf %45 : vector<16x128xf32> to vector<16x128xbf16>
    %47 = arith.index_cast %c0_i32_6 : i32 to index
    %c0_14 = arith.constant 0 : index
    %c0_15 = arith.constant 0 : index
    %48 = vector.load %arg7[%47, %c0_14, %c0_15] : memref<3x16x128xbf16, #tpu.memory_space<vmem>>, vector<1x16x128xbf16>
    %49 = vector.shape_cast %48 : vector<1x16x128xbf16> to vector<16x128xbf16>
    %50 = vector.shape_cast %46 : vector<16x128xbf16> to vector<1x16x128xbf16>
    tpu.vector_store %arg7[%47, %c0_14, %c0_15], %50 {strides = array<i32>} : memref<3x16x128xbf16, #tpu.memory_space<vmem>>, vector<1x16x128xbf16>,
    %51 = arith.addi %0, %c0_i32_6 : i32
    %c8_i32 = arith.constant 8 : i32
    %52 = arith.cmpi slt, %51, %c8_i32 : i32
    %53 = arith.extui %52 : i1 to i32
    %54 = arith.sitofp %53 : i32 to f32
    %55 = arith.subf %45, %10 : vector<16x128xf32>
    %56 = vector.broadcast %54 : f32 to vector<16x128xf32>
    %57 = arith.mulf %56, %55 : vector<16x128xf32>
    %58 = arith.addf %10, %57 : vector<16x128xf32>
    %c1_i32 = arith.constant 1 : i32
    %59 = arith.index_cast %c1_i32 : i32 to index
    %c0_16 = arith.constant 0 : index
    %c0_17 = arith.constant 0 : index
    %60 = vector.load %arg3[%59, %c0_16, %c0_17] : memref<3x16x384xbf16, #tpu.memory_space<vmem>>, vector<1x16x384xbf16>
    %61 = vector.shape_cast %60 : vector<1x16x384xbf16> to vector<16x384xbf16>
    %62 = arith.extf %61 : vector<16x384xbf16> to vector<16x384xf32>
    %63 = arith.addf %62, %6 : vector<16x384xf32>
    %64 = arith.truncf %58 : vector<16x128xf32> to vector<16x128xbf16>
    %c0_18 = arith.constant 0 : index
    %c0_19 = arith.constant 0 : index
    %65 = vector.load %arg4[%c0_18, %c0_19] : memref<128x384xbf16, #tpu.memory_space<vmem>>, vector<128x384xbf16>
    %cst_20 = arith.constant dense<0.000000e+00> : vector<16x384xf32>
    %66 = tpu.matmul %64, %65, %cst_20 {dimension_numbers = #tpu.dot_dimension_numbers<[1], [0], [0], [1], [0, 0, 1, 1], [], []>} : vector<16x128xbf16>, vector<128x384xbf16>, vector<16x384xf32> -> vector<16x384xf32>
    %67 = vector.extract_strided_slice %63 {offsets = [0, 0], sizes = [16, 128], strides = [1, 1]} : vector<16x384xf32> to vector<16x128xf32>
    %68 = vector.extract_strided_slice %66 {offsets = [0, 0], sizes = [16, 128], strides = [1, 1]} : vector<16x384xf32> to vector<16x128xf32>
    %69 = arith.addf %67, %68 : vector<16x128xf32>
    %70 = arith.negf %69 : vector<16x128xf32>
    %71 = math.exp %70 : vector<16x128xf32>
    %cst_21 = arith.constant 1.000000e+00 : f32
    %72 = vector.broadcast %cst_21 : f32 to vector<16x128xf32>
    %73 = arith.addf %72, %71 : vector<16x128xf32>
    %74 = arith.divf %72, %73 : vector<16x128xf32>
    %75 = vector.extract_strided_slice %63 {offsets = [0, 128], sizes = [16, 128], strides = [1, 1]} : vector<16x384xf32> to vector<16x128xf32>
    %76 = vector.extract_strided_slice %66 {offsets = [0, 128], sizes = [16, 128], strides = [1, 1]} : vector<16x384xf32> to vector<16x128xf32>
    %77 = arith.addf %75, %76 : vector<16x128xf32>
    %78 = arith.negf %77 : vector<16x128xf32>
    %79 = math.exp %78 : vector<16x128xf32>
    %cst_22 = arith.constant 1.000000e+00 : f32
    %80 = vector.broadcast %cst_22 : f32 to vector<16x128xf32>
    %81 = arith.addf %80, %79 : vector<16x128xf32>
    %82 = arith.divf %80, %81 : vector<16x128xf32>
    %83 = vector.extract_strided_slice %63 {offsets = [0, 256], sizes = [16, 128], strides = [1, 1]} : vector<16x384xf32> to vector<16x128xf32>
    %84 = vector.extract_strided_slice %66 {offsets = [0, 256], sizes = [16, 128], strides = [1, 1]} : vector<16x384xf32> to vector<16x128xf32>
    %85 = arith.addf %84, %9 : vector<16x128xf32>
    %86 = arith.mulf %74, %85 : vector<16x128xf32>
    %87 = arith.addf %83, %86 : vector<16x128xf32>
    %88 = math.tanh %87 : vector<16x128xf32>
    %cst_23 = arith.constant 1.000000e+00 : f32
    %89 = vector.broadcast %cst_23 : f32 to vector<16x128xf32>
    %90 = arith.subf %89, %82 : vector<16x128xf32>
    %91 = arith.mulf %90, %88 : vector<16x128xf32>
    %92 = arith.mulf %82, %58 : vector<16x128xf32>
    %93 = arith.addf %91, %92 : vector<16x128xf32>
    %94 = arith.truncf %93 : vector<16x128xf32> to vector<16x128xbf16>
    %95 = arith.index_cast %c1_i32 : i32 to index
    %c0_24 = arith.constant 0 : index
    %c0_25 = arith.constant 0 : index
    %96 = vector.load %arg7[%95, %c0_24, %c0_25] : memref<3x16x128xbf16, #tpu.memory_space<vmem>>, vector<1x16x128xbf16>
    %97 = vector.shape_cast %96 : vector<1x16x128xbf16> to vector<16x128xbf16>
    %98 = vector.shape_cast %94 : vector<16x128xbf16> to vector<1x16x128xbf16>
    tpu.vector_store %arg7[%95, %c0_24, %c0_25], %98 {strides = array<i32>} : memref<3x16x128xbf16, #tpu.memory_space<vmem>>, vector<1x16x128xbf16>,
    %99 = arith.addi %0, %c1_i32 : i32
    %c8_i32_26 = arith.constant 8 : i32
    %100 = arith.cmpi slt, %99, %c8_i32_26 : i32
    %101 = arith.extui %100 : i1 to i32
    %102 = arith.sitofp %101 : i32 to f32
    %103 = arith.subf %93, %58 : vector<16x128xf32>
    %104 = vector.broadcast %102 : f32 to vector<16x128xf32>
    %105 = arith.mulf %104, %103 : vector<16x128xf32>
    %106 = arith.addf %58, %105 : vector<16x128xf32>
    %c2_i32 = arith.constant 2 : i32
    %107 = arith.index_cast %c2_i32 : i32 to index
    %c0_27 = arith.constant 0 : index
    %c0_28 = arith.constant 0 : index
    %108 = vector.load %arg3[%107, %c0_27, %c0_28] : memref<3x16x384xbf16, #tpu.memory_space<vmem>>, vector<1x16x384xbf16>
    %109 = vector.shape_cast %108 : vector<1x16x384xbf16> to vector<16x384xbf16>
    %110 = arith.extf %109 : vector<16x384xbf16> to vector<16x384xf32>
    %111 = arith.addf %110, %6 : vector<16x384xf32>
    %112 = arith.truncf %106 : vector<16x128xf32> to vector<16x128xbf16>
    %c0_29 = arith.constant 0 : index
    %c0_30 = arith.constant 0 : index
    %113 = vector.load %arg4[%c0_29, %c0_30] : memref<128x384xbf16, #tpu.memory_space<vmem>>, vector<128x384xbf16>
    %cst_31 = arith.constant dense<0.000000e+00> : vector<16x384xf32>
    %114 = tpu.matmul %112, %113, %cst_31 {dimension_numbers = #tpu.dot_dimension_numbers<[1], [0], [0], [1], [0, 0, 1, 1], [], []>} : vector<16x128xbf16>, vector<128x384xbf16>, vector<16x384xf32> -> vector<16x384xf32>
    %115 = vector.extract_strided_slice %111 {offsets = [0, 0], sizes = [16, 128], strides = [1, 1]} : vector<16x384xf32> to vector<16x128xf32>
    %116 = vector.extract_strided_slice %114 {offsets = [0, 0], sizes = [16, 128], strides = [1, 1]} : vector<16x384xf32> to vector<16x128xf32>
    %117 = arith.addf %115, %116 : vector<16x128xf32>
    %118 = arith.negf %117 : vector<16x128xf32>
    %119 = math.exp %118 : vector<16x128xf32>
    %cst_32 = arith.constant 1.000000e+00 : f32
    %120 = vector.broadcast %cst_32 : f32 to vector<16x128xf32>
    %121 = arith.addf %120, %119 : vector<16x128xf32>
    %122 = arith.divf %120, %121 : vector<16x128xf32>
    %123 = vector.extract_strided_slice %111 {offsets = [0, 128], sizes = [16, 128], strides = [1, 1]} : vector<16x384xf32> to vector<16x128xf32>
    %124 = vector.extract_strided_slice %114 {offsets = [0, 128], sizes = [16, 128], strides = [1, 1]} : vector<16x384xf32> to vector<16x128xf32>
    %125 = arith.addf %123, %124 : vector<16x128xf32>
    %126 = arith.negf %125 : vector<16x128xf32>
    %127 = math.exp %126 : vector<16x128xf32>
    %cst_33 = arith.constant 1.000000e+00 : f32
    %128 = vector.broadcast %cst_33 : f32 to vector<16x128xf32>
    %129 = arith.addf %128, %127 : vector<16x128xf32>
    %130 = arith.divf %128, %129 : vector<16x128xf32>
    %131 = vector.extract_strided_slice %111 {offsets = [0, 256], sizes = [16, 128], strides = [1, 1]} : vector<16x384xf32> to vector<16x128xf32>
    %132 = vector.extract_strided_slice %114 {offsets = [0, 256], sizes = [16, 128], strides = [1, 1]} : vector<16x384xf32> to vector<16x128xf32>
    %133 = arith.addf %132, %9 : vector<16x128xf32>
    %134 = arith.mulf %122, %133 : vector<16x128xf32>
    %135 = arith.addf %131, %134 : vector<16x128xf32>
    %136 = math.tanh %135 : vector<16x128xf32>
    %cst_34 = arith.constant 1.000000e+00 : f32
    %137 = vector.broadcast %cst_34 : f32 to vector<16x128xf32>
    %138 = arith.subf %137, %130 : vector<16x128xf32>
    %139 = arith.mulf %138, %136 : vector<16x128xf32>
    %140 = arith.mulf %130, %106 : vector<16x128xf32>
    %141 = arith.addf %139, %140 : vector<16x128xf32>
    %142 = arith.truncf %141 : vector<16x128xf32> to vector<16x128xbf16>
    %143 = arith.index_cast %c2_i32 : i32 to index
    %c0_35 = arith.constant 0 : index
    %c0_36 = arith.constant 0 : index
    %144 = vector.load %arg7[%143, %c0_35, %c0_36] : memref<3x16x128xbf16, #tpu.memory_space<vmem>>, vector<1x16x128xbf16>
    %145 = vector.shape_cast %144 : vector<1x16x128xbf16> to vector<16x128xbf16>
    %146 = vector.shape_cast %142 : vector<16x128xbf16> to vector<1x16x128xbf16>
    tpu.vector_store %arg7[%143, %c0_35, %c0_36], %146 {strides = array<i32>} : memref<3x16x128xbf16, #tpu.memory_space<vmem>>, vector<1x16x128xbf16>,
    %147 = arith.addi %0, %c2_i32 : i32
    %c8_i32_37 = arith.constant 8 : i32
    %148 = arith.cmpi slt, %147, %c8_i32_37 : i32
    %149 = arith.extui %148 : i1 to i32
    %150 = arith.sitofp %149 : i32 to f32
    %151 = arith.subf %141, %106 : vector<16x128xf32>
    %152 = vector.broadcast %150 : f32 to vector<16x128xf32>
    %153 = arith.mulf %152, %151 : vector<16x128xf32>
    %154 = arith.addf %106, %153 : vector<16x128xf32>
    %c3_i32_38 = arith.constant 3 : i32
    %c0_39 = arith.constant 0 : index
    %c0_40 = arith.constant 0 : index
    %155 = vector.load %arg9[%c0_39, %c0_40] : memref<16x128xf32, #tpu.memory_space<vmem>>, vector<16x128xf32>
    tpu.vector_store %arg9[%c0_39, %c0_40], %154 {strides = array<i32>} : memref<16x128xf32, #tpu.memory_space<vmem>>, vector<16x128xf32>,
    %c0_41 = arith.constant 0 : index
    %c0_42 = arith.constant 0 : index
    %156 = vector.load %arg9[%c0_41, %c0_42] : memref<16x128xf32, #tpu.memory_space<vmem>>, vector<16x128xf32>
    %c0_43 = arith.constant 0 : index
    %c0_44 = arith.constant 0 : index
    %157 = vector.load %arg8[%c0_43, %c0_44] : memref<16x128xf32, #tpu.memory_space<vmem>>, vector<16x128xf32>
    tpu.vector_store %arg8[%c0_43, %c0_44], %156 {strides = array<i32>} : memref<16x128xf32, #tpu.memory_space<vmem>>, vector<16x128xf32>,
    return
  }
  func.func @transform_0(%arg0: i32, %arg1: i32) -> (i32, i32, i32) {
    %c0_i32 = arith.constant 0 : i32
    %c0_i32_0 = arith.constant 0 : i32
    %c0_i32_1 = arith.constant 0 : i32
    return %c0_i32, %arg0, %c0_i32_0 : i32, i32, i32
  }
  func.func @transform_1(%arg0: i32, %arg1: i32) -> (i32, i32, i32) {
    %c0_i32 = arith.constant 0 : i32
    %c0_i32_0 = arith.constant 0 : i32
    return %arg1, %arg0, %c0_i32 : i32, i32, i32
  }
  func.func @transform_2(%arg0: i32, %arg1: i32) -> (i32, i32) {
    %c0_i32 = arith.constant 0 : i32
    %c0_i32_0 = arith.constant 0 : i32
    %c0_i32_1 = arith.constant 0 : i32
    return %c0_i32, %c0_i32_0 : i32, i32
  }
  func.func @transform_3(%arg0: i32, %arg1: i32) -> (i32, i32) {
    %c0_i32 = arith.constant 0 : i32
    %c0_i32_0 = arith.constant 0 : i32
    %c0_i32_1 = arith.constant 0 : i32
    return %c0_i32, %c0_i32_0 : i32, i32
  }
  func.func @transform_4(%arg0: i32, %arg1: i32) -> (i32, i32) {
    %c0_i32 = arith.constant 0 : i32
    %c0_i32_0 = arith.constant 0 : i32
    %c0_i32_1 = arith.constant 0 : i32
    return %c0_i32, %c0_i32_0 : i32, i32
  }
  func.func @transform_5(%arg0: i32, %arg1: i32) -> (i32, i32, i32) {
    %c0_i32 = arith.constant 0 : i32
    %c0_i32_0 = arith.constant 0 : i32
    return %arg1, %arg0, %c0_i32 : i32, i32, i32
  }
  func.func @transform_6(%arg0: i32, %arg1: i32) -> (i32, i32) {
    %c0_i32 = arith.constant 0 : i32
    %c0_i32_0 = arith.constant 0 : i32
    return %arg0, %c0_i32 : i32, i32
  }
}

</mosaic_0001>

<bundles_post_ra>
// kernel: encoder_rnn_forward.1
= control target key start
LH: loop header
LB: loop body
LE: loop exit
PB: predicated region body
PF: predicated region fallthrough
CT: control target
= control target key end

     0   :  { %s1926_s21 = smov 0   ;;  %s1928_s22 = smov 0   ;;  %s2304_s0 = inlined_call_operand.vmem [shape: f32[1,16,128], index: 0, kind: input, shape index: {}]   ;;  %s2305_s1 = inlined_call_operand.vmem [shape: bf16[9,16,384], index: 1, kind: input, shape index: {}]   ;;  %s2306_s2 = inlined_call_operand.vmem [shape: bf16[128,384], index: 2, kind: input, shape index: {}]   ;;  %s2307_s3 = inlined_call_operand.vmem [shape: f32[1,384], index: 3, kind: input, shape index: {}]   ;;  %s2308_s4 = inlined_call_operand.vmem [shape: f32[1,128], index: 4, kind: input, shape index: {}]   ;;  %s2309_s5 = inlined_call_operand.vmem [shape: bf16[9,16,128], index: 5, kind: output, shape index: {0}]   ;;  %s2310_s6 = inlined_call_operand.vmem [shape: f32[16,128], index: 6, kind: output, shape index: {1}]  }
   0x1   :  { %s1930_s23 = smov 0  }
   0x2 LB: > { %s26_s24 = sadd.s32 1, %s1882_s22  ;;  %p1505_p0 = scmp.ge.s32.totalorder %s1886_s23, 1  ;;  %s1886_s23 = sphi %s1930_s23, %s17_s23   ;;  %s1882_s22 = sphi %s1928_s22, %s2312_s22   ;;  %s1878_s21 = sphi %s1926_s21, %s2311_s21  }
   0x3   : > { %p27_p1 = scmp.ge.s32.totalorder %s26_s24, 3  ;;  %p250_p2 = scmp.lt.s32.totalorder %s1886_s23, 4 }
   0x5   : > { %s2314_s24 = smov (%p27_p1, %s26_s24), 0  ;;  %p251_p3 = pnand %p1505_p0, %p250_p2 }
   0x6   : > { %s1944_s25 = smul.u32 (!%p251_p3), 3, %s1878_s21  ;;  %p1509_p5 = scmp.ne.s32.totalorder (!%p251_p3), %s1878_s21, 0 }
   0x7   : > { %254 = sbr.rel (%p251_p3) target bundleno = 862 (0x35e), region = 40 }
   0x8   : > { %p309_p4 = scmp.lt.s32.totalorder (!%p251_p3), %s1944_s25, 8 }
   0xe   : > { %s310_s26 = scalar_select %p309_p4, %s1944_s25, 8 }
   0xf   : > { %343 = sbr.rel (%p1509_p5) target bundleno = 22 (0x16), region = 44  ;;  %v344_v0 = vld [vmem:[%s2304_s0] sm:$0xff] (!%p1509_p5)  ;;  %v345_v1 = vld [vmem:[%s2304_s0 + $0x8] sm:$0xff] (!%p1509_p5) }
  0x10   : > { %s1728_s27 = smul.u32 24, %s310_s26  ;;  %s1617_s28 = sshll.u32 %s310_s26, 3  ;;  %346 = vst [vmem:[#allocation2] sm:$0xff] (!%p1509_p5), %v344_v0  ;;  %347 = vst [vmem:[#allocation2 + $0x8] sm:$0xff] (!%p1509_p5), %v345_v1 }
  0x11   : > { %s1953_s7 = scalar_lea.vmem %s2309_s5, %s1617_s28 }
  0x12   : > { %s1958_s10 = scalar_lea.vmem %s2305_s1, %s1728_s27 }
  0x16 PF: > { %v1969_v2 = vld [vmem:[%s2306_s2 + $0x4] ss:$12 sps:$4 sm:$0xff]   ;;  %v1974_v3 = vld [vmem:[%s2306_s2] ss:$12 sps:$4 sm:$0xff]   ;;  %v1888_v4 = vmov 0.0   ;;  %v1889_v5 = vmov 0   ;;  %v350_v39 = vlaneseq }
  0x17   : > { %1668 = vmatprep.subr.bf16.mxu1 %v1888_v4  ;;  %583 = vmatprep.mubr.bf16.mxu0 %v1889_v5  ;;  %v1982_v6 = vld [vmem:[%s2306_s2 + $0x1c] ss:$12 sps:$4 sm:$0xff]   ;;  %vm1890_vm0 = vmmov 0   ;;  %v1990_v7 = vld [vmem:[%s2306_s2 + $0x18] ss:$12 sps:$4 sm:$0xff]   ;;  %v376_v45 = vld [vmem:[%s1958_s10 + $0xc] sm:$0xff] }
  0x18   : > { %551 = vmatprep.subr.bf16.mxu0 %v1969_v2  ;;  %1684 = vmatprep.mubr.msk.bf16.mxu1 %vm1890_vm0, %v1888_v4  ;;  %v1996_v8 = vld [vmem:[%s2306_s2 + $0x34] ss:$12 sps:$4 sm:$0xff]   ;;  %v2002_v9 = vld [vmem:[%s2306_s2 + $0x30] ss:$12 sps:$4 sm:$0xff]   ;;  %v2008_v10 = vld [vmem:[%s2306_s2 + $0x4c] ss:$12 sps:$4 sm:$0xff]   ;;  %v381_v48 = vunpack.c.l.bf16 %v376_v45  ;;  %v382_v52 = vunpack.c.h.bf16 %v376_v45 }
  0x19   : > { %552 = vmatpush1.bf16.msra.mxu0 %v1974_v3  ;;  %v1776_v11 = vld [vmem:[%s2306_s2 + $0x8] ss:$12 sps:$4 sm:$0xff]   ;;  %v2023_v13 = vld [vmem:[%s2306_s2 + $0x64] ss:$12 sps:$4 sm:$0xff]   ;;  %v1780_v14 = vld [vmem:[%s2306_s2 + $0x20] ss:$12 sps:$4 sm:$0xff]  }
  0x1a   : > { %553 = vmatprep.subr.bf16.mxu0 %v1982_v6  ;;  %v2017_v12 = vld [vmem:[%s2306_s2 + $0x48] ss:$12 sps:$4 sm:$0xff]   ;;  %1669 = vmatpush3.bf16.msra.mxu1 %v1776_v11  ;;  %v2032_v15 = vld [vmem:[%s2306_s2 + $0x60] ss:$12 sps:$4 sm:$0xff]   ;;  %v1782_v16 = vld [vmem:[%s2306_s2 + $0x38] ss:$12 sps:$4 sm:$0xff]  }
  0x1b   : > { %1670 = vmatprep.subr.bf16.mxu1 %v1888_v4  ;;  %v2042_v17 = vld [vmem:[%s2306_s2 + $0x7c] ss:$12 sps:$4 sm:$0xff]   ;;  %v2049_v18 = vld [vmem:[%s2306_s2 + $0x78] ss:$12 sps:$4 sm:$0xff]   ;;  %v2054_v19 = vld [vmem:[%s2306_s2 + $0x94] ss:$12 sps:$4 sm:$0xff]  }
  0x1c   : > { %v1783_v20 = vld [vmem:[%s2306_s2 + $0x50] ss:$12 sps:$4 sm:$0xff]   ;;  %v1784_v22 = vld [vmem:[%s2306_s2 + $0x68] ss:$12 sps:$4 sm:$0xff]   ;;  %v2072_v23 = vld [vmem:[%s2306_s2 + $0xac] ss:$12 sps:$4 sm:$0xff]  }
  0x1d   : > { %554 = vmatpush1.bf16.msra.mxu0 %v1990_v7  ;;  %v2064_v21 = vld [vmem:[%s2306_s2 + $0x90] ss:$12 sps:$4 sm:$0xff]   ;;  %v2080_v24 = vld [vmem:[%s2306_s2 + $0xa8] ss:$12 sps:$4 sm:$0xff]   ;;  %v2082_v25 = vld [vmem:[#allocation2] sm:$0xff]  ;;  %v351_v40 = vshrl.u32 %v350_v39, 7 }
  0x1e   : > { %555 = vmatprep.subr.bf16.mxu0 %v1996_v8  ;;  %1671 = vmatpush3.bf16.msra.mxu1 %v1780_v14  ;;  %v2084_v26 = vld [vmem:[#allocation2 + $0x8] sm:$0xff]  ;;  %v1786_v29 = vld [vmem:[%s2306_s2 + $0x98] ss:$12 sps:$4 sm:$0xff]   ;;  %v1787_v30 = vld [vmem:[%s2306_s2 + $0xb0] ss:$12 sps:$4 sm:$0xff]  }
  0x1f   : > { %1672 = vmatprep.subr.bf16.mxu1 %v1888_v4  ;;  %v1785_v27 = vld [vmem:[%s2306_s2 + $0x80] ss:$12 sps:$4 sm:$0xff]   ;;  %v390_v28 = vpack.c.bf16 %v2084_v26, %v2082_v25  ;;  %v1788_v31 = vld [vmem:[%s2306_s2 + $0x8] ss:$12 sps:$4 sm:$0xff]   ;;  %v1790_v33 = vld [vmem:[%s2306_s2 + $0x38] ss:$12 sps:$4 sm:$0xff]  }
  0x20   : > { %v1789_v32 = vld [vmem:[%s2306_s2 + $0x20] ss:$12 sps:$4 sm:$0xff]   ;;  %v1791_v34 = vld [vmem:[%s2306_s2 + $0x50] ss:$12 sps:$4 sm:$0xff]   ;;  %v1792_v35 = vld [vmem:[%s2306_s2 + $0x68] ss:$12 sps:$4 sm:$0xff]  }
  0x21   : > { %556 = vmatpush1.bf16.msra.mxu0 %v2002_v9  ;;  %v1793_v36 = vld [vmem:[%s2306_s2 + $0x80] ss:$12 sps:$4 sm:$0xff]   ;;  %v1794_v37 = vld [vmem:[%s2306_s2 + $0x98] ss:$12 sps:$4 sm:$0xff]   ;;  %v1795_v38 = vld [vmem:[%s2306_s2 + $0xb0] ss:$12 sps:$4 sm:$0xff]  }
  0x22   : > { %557 = vmatprep.subr.bf16.mxu0 %v2008_v10  ;;  %1673 = vmatpush3.bf16.msra.mxu1 %v1782_v16  ;;  %v352_v41 = vsub.s32 0, %v351_v40  ;;  %v348_v42 = vld [vmem:[%s2307_s3] sm:$0x7]  ;;  %v356_v44 = vsub.s32 1, %v351_v40  ;;  %s690_s11 = scalar_select %p309_p4, 1, 0 }
  0x23   : > { %1674 = vmatprep.subr.bf16.mxu1 %v1888_v4  ;;  %v374_v43 = vld [vmem:[%s1958_s10] sm:$0xff] }
  0x24   : > { %v2161_v46 = vrot.slane %v348_v42, %v352_v41  ;;  %v378_v47 = vunpack.c.l.bf16 %v374_v43  ;;  %v2163_v49 = vrot.slane %v348_v42, %v356_v44  ;;  %v379_v50 = vunpack.c.h.bf16 %v374_v43  ;;  %s691_s12 = scvt.s32.f32 %s690_s11  ;;  %s1016_s11 = sadd.s32 1, %s1944_s25 }
  0x25   : > { %558 = vmatpush1.bf16.msra.mxu0 %v2017_v12  ;;  %p1017_p6 = scmp.lt.s32.totalorder %s1016_s11, 8 }
  0x26   : > { %559 = vmatprep.subr.bf16.mxu0 %v2023_v13  ;;  %1675 = vmatpush3.bf16.msra.mxu1 %v1783_v20  ;;  %v384_v51 = vadd.f32 %v378_v47, %v2161_v46  ;;  %v387_v53 = vadd.f32 %v381_v48, %v2161_v46  ;;  %v385_v55 = vadd.f32 %v379_v50, %v2163_v49 }
  0x27   : > { %1676 = vmatprep.subr.bf16.mxu1 %v1888_v4  ;;  %v388_v59 = vadd.f32 %v382_v52, %v2163_v49 }
  0x29   : > { %560 = vmatpush1.bf16.msra.mxu0 %v2032_v15 }
  0x2a   : > { %561 = vmatprep.subr.bf16.mxu0 %v2042_v17  ;;  %1677 = vmatpush3.bf16.msra.mxu1 %v1784_v22 }
  0x2b   : > { %1678 = vmatprep.subr.bf16.mxu1 %v1888_v4 }
  0x2d   : > { %562 = vmatpush1.bf16.msra.mxu0 %v2049_v18 }
  0x2e   : > { %563 = vmatprep.subr.bf16.mxu0 %v2054_v19  ;;  %1679 = vmatpush3.bf16.msra.mxu1 %v1785_v27 }
  0x2f   : > { %1680 = vmatprep.subr.bf16.mxu1 %v1888_v4 }
  0x31   : > { %564 = vmatpush1.bf16.msra.mxu0 %v2064_v21 }
  0x32   : > { %565 = vmatprep.subr.bf16.mxu0 %v2072_v23  ;;  %1681 = vmatpush3.bf16.msra.mxu1 %v1786_v29 }
  0x33   : > { %1682 = vmatprep.subr.bf16.mxu1 %v1888_v4 }
  0x35   : > { %566 = vmatpush1.bf16.msra.mxu0 %v2080_v24 }
  0x36   : > { %877 = vmatprep.subr.bf16.mxu0 %v1969_v2  ;;  %1683 = vmatpush3.bf16.msra.mxu1 %v1787_v30 }
  0x37   : > { %1688 = vmatprep.subr.bf16.mxu1 %v1888_v4 }
  0x38   : > { %584 = vmatmul.mubr.bf16.vlgmr.msra.gmra.mrb[0].mxu0 %v390_v28 }
  0x39   : > { %878 = vmatpush1.bf16.msra.mxu0 %v1974_v3  ;;  %909 = vmatprep.mubr.bf16.mxu0 %v1889_v5 }
  0x3a   : > { %879 = vmatprep.subr.bf16.mxu0 %v1982_v6  ;;  %1685 = vmatmul.mubr.bf16.vlgmr.msra.gmra.mrb[0].mxu1 %v390_v28 }
  0x3b   : > { %1704 = vmatprep.mubr.msk.bf16.mxu1 %vm1890_vm0, %v1888_v4  ;;  %1689 = vmatpush3.bf16.msra.mxu1 %v1788_v31  ;;  %v360_v31 = vsub.s32 2, %v351_v40 }
  0x3c   : > { %1690 = vmatprep.subr.bf16.mxu1 %v1888_v4 }
  0x3d   : > { %880 = vmatpush1.bf16.msra.mxu0 %v1990_v7 }
  0x3e   : > { %881 = vmatprep.subr.bf16.mxu0 %v1996_v8 }
  0x3f   : > { %1691 = vmatpush3.bf16.msra.mxu1 %v1789_v32  ;;  %v375_v32 = vld [vmem:[%s1958_s10 + $0x8] ss:$12 sps:$4 sm:$0xff]  }
  0x40   : > { %1692 = vmatprep.subr.bf16.mxu1 %v1888_v4  ;;  %v383_v41 = vunpack.c.h.bf16 %v375_v32 }
  0x41   : > { %882 = vmatpush1.bf16.msra.mxu0 %v2002_v9 }
  0x42   : > { %883 = vmatprep.subr.bf16.mxu0 %v2008_v10 }
  0x43   : > { %1693 = vmatpush3.bf16.msra.mxu1 %v1790_v33 }
  0x44   : > { %1694 = vmatprep.subr.bf16.mxu1 %v1888_v4 }
  0x45   : > { %884 = vmatpush1.bf16.msra.mxu0 %v2017_v12 }
  0x46   : > { %885 = vmatprep.subr.bf16.mxu0 %v2023_v13 }
  0x47   : > { %1695 = vmatpush3.bf16.msra.mxu1 %v1791_v34  ;;  %v2173_v34 = vld [vmem:[%s2308_s4] ss:$0 sm:$0xff] }
  0x48   : > { %1696 = vmatprep.subr.bf16.mxu1 %v1888_v4 }
  0x49   : > { %886 = vmatpush1.bf16.msra.mxu0 %v2032_v15 }
  0x4a   : > { %887 = vmatprep.subr.bf16.mxu0 %v2042_v17 }
  0x4b   : > { %1697 = vmatpush3.bf16.msra.mxu1 %v1792_v35  ;;  %v2175_v35 = vrot.slane %v348_v42, %v360_v31 }
  0x4c   : > { %1698 = vmatprep.subr.bf16.mxu1 %v1888_v4 }
  0x4d   : > { %888 = vmatpush1.bf16.msra.mxu0 %v2049_v18  ;;  %v389_v47 = vadd.f32 %v383_v41, %v2175_v35 }
  0x4e   : > { %889 = vmatprep.subr.bf16.mxu0 %v2054_v19 }
  0x4f   : > { %1699 = vmatpush3.bf16.msra.mxu1 %v1793_v36  ;;  %v380_v36 = vunpack.c.l.bf16 %v375_v32 }
  0x50   : > { %1700 = vmatprep.subr.bf16.mxu1 %v1888_v4 }
  0x51   : > { %890 = vmatpush1.bf16.msra.mxu0 %v2064_v21  ;;  %v386_v40 = vadd.f32 %v380_v36, %v2175_v35 }
  0x52   : > { %891 = vmatprep.subr.bf16.mxu0 %v2072_v23 }
  0x53   : > { %1701 = vmatpush3.bf16.msra.mxu1 %v1794_v37 }
  0x54   : > { %1702 = vmatprep.subr.bf16.mxu1 %v1888_v4 }
  0x55   : > { %892 = vmatpush1.bf16.msra.mxu0 %v2080_v24 }
  0x56   : > { %1205 = vmatprep.subr.bf16.mxu0 %v1969_v2 }
  0x57   : > { %1703 = vmatpush3.bf16.msra.mxu1 %v1795_v38 }
  0x58   : > { %1708 = vmatprep.subr.bf16.mxu1 %v1888_v4 }
 0x10b   : > { %v585_v54 = vpop.f32.mrb[0].mxu0 }
 0x10c   : > { %v635_v56 = vadd.f32 %v585_v54, %v384_v51  ;;  %v587_v57 = vpop.f32.mrb[1].mxu0 }
 0x10d   : > { %v589_v58 = vpop.f32.mrb[2].mxu0  ;;  %v649_v63 = vadd.f32 %v587_v57, %v385_v55  ;;  %v628_v11 = vpop.f32.mrb[0].mxu1 }
 0x10e   : > { %v1535_v60 = vmul.f32 -1.442695, %v635_v56  ;;  %v636_v61 = vadd.f32 %v589_v58, %v387_v53  ;;  %v591_v62 = vpop.f32.mrb[3].mxu0  ;;  %v1686_v14 = vpop.f32.mrb[1].mxu1  ;;  %v663_v39 = vadd.f32 %v2173_v34, %v628_v11 }
 0x10f   : > { %v650_v1 = vadd.f32 %v591_v62, %v388_v59  ;;  %v1537_v2 = vmul.f32 -1.442695, %v649_v63  ;;  %v631_v20 = vpop.f32.mrb[2].mxu1 }
 0x110   : > { %1804 = vpow2.f32 %v1535_v60  ;;  %v1536_v0 = vmul.f32 -1.442695, %v636_v61  ;;  %v1687_v22 = vpop.f32.mrb[3].mxu1  ;;  %v664_v48 = vadd.f32 %v2173_v34, %v631_v20 }
 0x111   : > { %v1538_v16 = vmul.f32 -1.442695, %v650_v1 }
 0x112   : > { %1806 = vpow2.f32 %v1536_v0  ;;  %v694_v0 = vstv %s691_s12  ;;  %s1018_s12 = scalar_select %p1017_p6, 1, 0 }
 0x113   : > { %1808 = vpow2.f32 %v1537_v2 }
 0x114   : > { %1810 = vpow2.f32 %v1538_v16  ;;  %s1019_s13 = scvt.s32.f32 %s1018_s12 }
 0x11a   : > { %v1805_v27 = vpop.eup %1804 }
 0x11b   : > { %v643_v28 = vadd.f32 1.0, %v1805_v27 }
 0x11c   : > { %v1807_v29 = vpop.eup %1806 }
 0x11d   : > { %1812 = vrcp.f32 %v643_v28  ;;  %v644_v30 = vadd.f32 1.0, %v1807_v29  ;;  %v1809_v33 = vpop.eup %1808 }
 0x11e   : > { %v1811_v37 = vpop.eup %1810  ;;  %v657_v38 = vadd.f32 1.0, %v1809_v33 }
 0x11f   : > { %1814 = vrcp.f32 %v644_v30  ;;  %v658_v43 = vadd.f32 1.0, %v1811_v37 }
 0x120   : > { %1816 = vrcp.f32 %v657_v38 }
 0x121   : > { %1818 = vrcp.f32 %v658_v43 }
 0x127   : > { %v1813_v44 = vpop.eup %1812 }
 0x128   : > { %v665_v45 = vmul.f32 %v1813_v44, %v663_v39 }
 0x129   : > { %v1815_v50 = vpop.eup %1814 }
 0x12a   : > { %v667_v42 = vadd.f32 %v665_v45, %v386_v40  ;;  %v666_v51 = vmul.f32 %v1815_v50, %v664_v48  ;;  %v1817_v53 = vpop.eup %1816 }
 0x12b   : > { %v1819_v54 = vpop.eup %1818  ;;  %v671_v55 = vsub.f32 1.0, %v1817_v53  ;;  %v675_v57 = vmul.f32 %v1817_v53, %v2082_v25 }
 0x12c   : > { %1820 = vtanh.f32 %v667_v42  ;;  %v668_v52 = vadd.f32 %v666_v51, %v389_v47  ;;  %v672_v58 = vsub.f32 1.0, %v1819_v54  ;;  %v676_v61 = vmul.f32 %v1819_v54, %v2084_v26 }
 0x12e   : > { %1822 = vtanh.f32 %v668_v52  ;;  %v1542_v52 = vld [vmem:[%s1958_s10 + $0x20] ss:$12 sps:$4 sm:$0xff]  }
 0x12f   : > { %v706_v54 = vunpack.c.l.bf16 %v1542_v52 }
 0x136   : > { %v1821_v56 = vpop.eup %1820 }
 0x137   : > { %v673_v59 = vmul.f32 %v1821_v56, %v671_v55 }
 0x138   : > { %v1823_v60 = vpop.eup %1822 }
 0x139   : > { %v677_v62 = vadd.f32 %v675_v57, %v673_v59  ;;  %v674_v63 = vmul.f32 %v1823_v60, %v672_v58  ;;  %v709_v57 = vunpack.c.h.bf16 %v1542_v52  ;;  %v712_v58 = vadd.f32 %v706_v54, %v2175_v35 }
 0x13b   : > { %v678_v1 = vadd.f32 %v676_v61, %v674_v63  ;;  %v692_v2 = vsub.f32 %v677_v62, %v2082_v25  ;;  %v715_v63 = vadd.f32 %v709_v57, %v2175_v35 }
 0x13d   : > { %v1627_v11 = vpack.c.bf16 %v678_v1, %v677_v62  ;;  %v693_v14 = vsub.f32 %v678_v1, %v2084_v26  ;;  %v695_v16 = vmul.f32 %v694_v0, %v692_v2 }
 0x13f   : > { %1628 = vst [vmem:[%s1953_s7] sm:$0xff] %v1627_v11   ;;  %v696_v20 = vmul.f32 %v694_v0, %v693_v14  ;;  %v2189_v22 = vadd.f32 %v695_v16, %v2082_v25 }
 0x141   : > { %v2192_v27 = vadd.f32 %v696_v20, %v2084_v26 }
 0x143   : > { %v716_v28 = vpack.c.bf16 %v2192_v27, %v2189_v22 }
 0x145   : > { %910 = vmatmul.mubr.bf16.vlgmr.msra.gmra.mrb[4].mxu0 %v716_v28  ;;  %1705 = vmatmul.mubr.bf16.vlgmr.msra.gmra.mrb[4].mxu1 %v716_v28 }
 0x146   : > { %1206 = vmatpush1.bf16.msra.mxu0 %v1974_v3  ;;  %1237 = vmatprep.mubr.bf16.mxu0 %v1889_v5  ;;  %v1796_v3 = vld [vmem:[%s2306_s2 + $0x8] ss:$12 sps:$4 sm:$0xff]   ;;  %v1797_v5 = vld [vmem:[%s2306_s2 + $0x20] ss:$12 sps:$4 sm:$0xff]  }
 0x147   : > { %1207 = vmatprep.subr.bf16.mxu0 %v1982_v6  ;;  %1724 = vmatprep.mubr.msk.bf16.mxu1 %vm1890_vm0, %v1888_v4  ;;  %v1798_v6 = vld [vmem:[%s2306_s2 + $0x38] ss:$12 sps:$4 sm:$0xff]  }
 0x148   : > { %1709 = vmatpush3.bf16.msra.mxu1 %v1796_v3 }
 0x149   : > { %1710 = vmatprep.subr.bf16.mxu1 %v1888_v4 }
 0x14a   : > { %1208 = vmatpush1.bf16.msra.mxu0 %v1990_v7  ;;  %v1799_v7 = vld [vmem:[%s2306_s2 + $0x50] ss:$12 sps:$4 sm:$0xff]  }
 0x14b   : > { %1209 = vmatprep.subr.bf16.mxu0 %v1996_v8  ;;  %v1800_v8 = vld [vmem:[%s2306_s2 + $0x68] ss:$12 sps:$4 sm:$0xff]  }
 0x14c   : > { %1711 = vmatpush3.bf16.msra.mxu1 %v1797_v5 }
 0x14d   : > { %1712 = vmatprep.subr.bf16.mxu1 %v1888_v4 }
 0x14e   : > { %1210 = vmatpush1.bf16.msra.mxu0 %v2002_v9  ;;  %v1801_v9 = vld [vmem:[%s2306_s2 + $0x80] ss:$12 sps:$4 sm:$0xff]  }
 0x14f   : > { %1211 = vmatprep.subr.bf16.mxu0 %v2008_v10  ;;  %v1802_v10 = vld [vmem:[%s2306_s2 + $0x98] ss:$12 sps:$4 sm:$0xff]  }
 0x150   : > { %1713 = vmatpush3.bf16.msra.mxu1 %v1798_v6 }
 0x151   : > { %1714 = vmatprep.subr.bf16.mxu1 %v1888_v4 }
 0x152   : > { %1212 = vmatpush1.bf16.msra.mxu0 %v2017_v12  ;;  %v1803_v12 = vld [vmem:[%s2306_s2 + $0xb0] ss:$12 sps:$4 sm:$0xff]  }
 0x153   : > { %1213 = vmatprep.subr.bf16.mxu0 %v2023_v13  ;;  %v1541_v13 = vld [vmem:[%s1958_s10 + $0x18] sm:$0xff] }
 0x154   : > { %1715 = vmatpush3.bf16.msra.mxu1 %v1799_v7 }
 0x155   : > { %1716 = vmatprep.subr.bf16.mxu1 %v1888_v4 }
 0x156   : > { %1214 = vmatpush1.bf16.msra.mxu0 %v2032_v15  ;;  %v1543_v15 = vld [vmem:[%s1958_s10 + $0x24] sm:$0xff] }
 0x157   : > { %1215 = vmatprep.subr.bf16.mxu0 %v2042_v17  ;;  %v704_v17 = vunpack.c.l.bf16 %v1541_v13 }
 0x158   : > { %1717 = vmatpush3.bf16.msra.mxu1 %v1800_v8 }
 0x159   : > { %1718 = vmatprep.subr.bf16.mxu1 %v1888_v4 }
 0x15a   : > { %1216 = vmatpush1.bf16.msra.mxu0 %v2049_v18  ;;  %v707_v18 = vunpack.c.l.bf16 %v1543_v15 }
 0x15b   : > { %1217 = vmatprep.subr.bf16.mxu0 %v2054_v19  ;;  %v705_v19 = vunpack.c.h.bf16 %v1541_v13  ;;  %v1022_v13 = vstv %s1019_s13 }
 0x15c   : > { %1719 = vmatpush3.bf16.msra.mxu1 %v1801_v9 }
 0x15d   : > { %1720 = vmatprep.subr.bf16.mxu1 %v1888_v4  ;;  %v711_v29 = vadd.f32 %v705_v19, %v2163_v49 }
 0x15e   : > { %1218 = vmatpush1.bf16.msra.mxu0 %v2064_v21  ;;  %v710_v21 = vadd.f32 %v704_v17, %v2161_v46 }
 0x15f   : > { %1219 = vmatprep.subr.bf16.mxu0 %v2072_v23  ;;  %v708_v23 = vunpack.c.h.bf16 %v1543_v15 }
 0x160   : > { %1721 = vmatpush3.bf16.msra.mxu1 %v1802_v10 }
 0x161   : > { %1722 = vmatprep.subr.bf16.mxu1 %v1888_v4  ;;  %v714_v36 = vadd.f32 %v708_v23, %v2163_v49 }
 0x162   : > { %1220 = vmatpush1.bf16.msra.mxu0 %v2080_v24  ;;  %v713_v24 = vadd.f32 %v707_v18, %v2161_v46 }
 0x164   : > { %1723 = vmatpush3.bf16.msra.mxu1 %v1803_v12 }
 0x218   : > { %v911_v25 = vpop.f32.mrb[4].mxu0  ;;  %v954_v26 = vpop.f32.mrb[4].mxu1 }
 0x219   : > { %v961_v4 = vadd.f32 %v911_v25, %v710_v21  ;;  %v913_v30 = vpop.f32.mrb[5].mxu0  ;;  %v1706_v31 = vpop.f32.mrb[5].mxu1  ;;  %v989_v59 = vadd.f32 %v2173_v34, %v954_v26 }
 0x21a   : > { %v915_v32 = vpop.f32.mrb[6].mxu0  ;;  %v957_v33 = vpop.f32.mrb[6].mxu1  ;;  %v975_v43 = vadd.f32 %v913_v30, %v711_v29  ;;  %v1577_v29 = vld [vmem:[%s1958_s10 + $0x30] sm:$0xff] }
 0x21b   : > { %v1569_v37 = vmul.f32 -1.442695, %v961_v4  ;;  %v962_v38 = vadd.f32 %v915_v32, %v713_v24  ;;  %v917_v39 = vpop.f32.mrb[7].mxu0  ;;  %v1707_v41 = vpop.f32.mrb[7].mxu1  ;;  %v990_v0 = vadd.f32 %v2173_v34, %v957_v33  ;;  %v1579_v4 = vld [vmem:[%s1958_s10 + $0x3c] sm:$0xff]  ;;  %v1032_v30 = vunpack.c.l.bf16 %v1577_v29 }
 0x21c   : > { %v976_v44 = vadd.f32 %v917_v39, %v714_v36  ;;  %v1571_v45 = vmul.f32 -1.442695, %v975_v43  ;;  %v1035_v31 = vunpack.c.l.bf16 %v1579_v4  ;;  %v1033_v32 = vunpack.c.h.bf16 %v1577_v29 }
 0x21d   : > { %1824 = vpow2.f32 %v1569_v37  ;;  %v1570_v40 = vmul.f32 -1.442695, %v962_v38  ;;  %v1038_v33 = vadd.f32 %v1032_v30, %v2161_v46  ;;  %v1036_v36 = vunpack.c.h.bf16 %v1579_v4 }
 0x21e   : > { %v1572_v47 = vmul.f32 -1.442695, %v976_v44  ;;  %v1041_v37 = vadd.f32 %v1035_v31, %v2161_v46 }
 0x21f   : > { %1826 = vpow2.f32 %v1570_v40 }
 0x220   : > { %1828 = vpow2.f32 %v1571_v45  ;;  %v1042_v45 = vadd.f32 %v1036_v36, %v2163_v49 }
 0x221   : > { %1830 = vpow2.f32 %v1572_v47 }
 0x227   : > { %v1825_v48 = vpop.eup %1824 }
 0x228   : > { %v969_v50 = vadd.f32 1.0, %v1825_v48 }
 0x229   : > { %v1827_v42 = vpop.eup %1826 }
 0x22a   : > { %1832 = vrcp.f32 %v969_v50  ;;  %v970_v51 = vadd.f32 1.0, %v1827_v42  ;;  %v1829_v53 = vpop.eup %1828 }
 0x22b   : > { %v1831_v55 = vpop.eup %1830  ;;  %v983_v56 = vadd.f32 1.0, %v1829_v53 }
 0x22c   : > { %1834 = vrcp.f32 %v970_v51  ;;  %v984_v60 = vadd.f32 1.0, %v1831_v55 }
 0x22d   : > { %1836 = vrcp.f32 %v983_v56 }
 0x22e   : > { %1838 = vrcp.f32 %v984_v60 }
 0x234   : > { %v1833_v61 = vpop.eup %1832 }
 0x235   : > { %v991_v62 = vmul.f32 %v1833_v61, %v989_v59 }
 0x236   : > { %v1835_v1 = vpop.eup %1834 }
 0x237   : > { %v993_v2 = vadd.f32 %v991_v62, %v712_v58  ;;  %v992_v11 = vmul.f32 %v1835_v1, %v990_v0  ;;  %v1837_v16 = vpop.eup %1836 }
 0x238   : > { %v1839_v20 = vpop.eup %1838  ;;  %v997_v28 = vsub.f32 1.0, %v1837_v16  ;;  %v1001_v6 = vmul.f32 %v1837_v16, %v2189_v22 }
 0x239   : > { %1840 = vtanh.f32 %v993_v2  ;;  %v994_v14 = vadd.f32 %v992_v11, %v715_v63  ;;  %v998_v7 = vsub.f32 1.0, %v1839_v20  ;;  %v1002_v12 = vmul.f32 %v1839_v20, %v2192_v27 }
 0x23b   : > { %1842 = vtanh.f32 %v994_v14 }
 0x243   : > { %v1841_v3 = vpop.eup %1840 }
 0x244   : > { %v999_v5 = vmul.f32 %v1841_v3, %v997_v28 }
 0x245   : > { %v1843_v8 = vpop.eup %1842 }
 0x246   : > { %v1003_v9 = vadd.f32 %v1001_v6, %v999_v5  ;;  %v1000_v10 = vmul.f32 %v1843_v8, %v998_v7 }
 0x248   : > { %v1004_v15 = vadd.f32 %v1002_v12, %v1000_v10  ;;  %v1020_v17 = vsub.f32 %v1003_v9, %v2189_v22 }
 0x24a   : > { %v1632_v18 = vpack.c.bf16 %v1004_v15, %v1003_v9  ;;  %v1021_v19 = vsub.f32 %v1004_v15, %v2192_v27  ;;  %v1023_v21 = vmul.f32 %v1022_v13, %v1020_v17 }
 0x24c   : > { %1639 = vst [vmem:[%s1953_s7 + $0x8] sm:$0xff] %v1632_v18   ;;  %v1024_v23 = vmul.f32 %v1022_v13, %v1021_v19  ;;  %v2263_v24 = vadd.f32 %v1023_v21, %v2189_v22 }
 0x24e   : > { %v2266_v25 = vadd.f32 %v1024_v23, %v2192_v27  ;;  %v1039_v27 = vadd.f32 %v1033_v32, %v2163_v49  ;;  %v1578_v49 = vld [vmem:[%s1958_s10 + $0x38] ss:$12 sps:$4 sm:$0xff]   ;;  %s1344_s10 = sadd.s32 2, %s1944_s25 }
 0x24f   : > { %v1034_v60 = vunpack.c.l.bf16 %v1578_v49  ;;  %v1037_v63 = vunpack.c.h.bf16 %v1578_v49  ;;  %p1345_p7 = scmp.lt.s32.totalorder %s1344_s10, 8 }
 0x250   : > { %v1044_v26 = vpack.c.bf16 %v2266_v25, %v2263_v24 }
 0x251   : > { %v1040_v0 = vadd.f32 %v1034_v60, %v2175_v35  ;;  %v1043_v16 = vadd.f32 %v1037_v63, %v2175_v35  ;;  %s1346_s14 = scalar_select %p1345_p7, 1, 0 }
 0x252   : > { %1238 = vmatmul.mubr.bf16.vlgmr.msra.gmra.mrb[8].mxu0 %v1044_v26  ;;  %1725 = vmatmul.mubr.bf16.vlgmr.msra.gmra.mrb[8].mxu1 %v1044_v26 }
 0x253   : > { %s1347_s15 = scvt.s32.f32 %s1346_s14 }
 0x255   : > { %v1350_v19 = vstv %s1347_s15 }
 0x325   : > { %v1239_v22 = vpop.f32.mrb[8].mxu0  ;;  %v1282_v38 = vpop.f32.mrb[8].mxu1 }
 0x326   : > { %v1289_v39 = vadd.f32 %v1239_v22, %v1038_v33  ;;  %v1241_v41 = vpop.f32.mrb[9].mxu0  ;;  %v1726_v43 = vpop.f32.mrb[9].mxu1  ;;  %v1317_v1 = vadd.f32 %v2173_v34, %v1282_v38 }
 0x327   : > { %v1243_v40 = vpop.f32.mrb[10].mxu0  ;;  %v1285_v44 = vpop.f32.mrb[10].mxu1  ;;  %v1303_v51 = vadd.f32 %v1241_v41, %v1039_v27 }
 0x328   : > { %v1605_v47 = vmul.f32 -1.442695, %v1289_v39  ;;  %v1290_v48 = vadd.f32 %v1243_v40, %v1041_v37  ;;  %v1245_v50 = vpop.f32.mrb[11].mxu0  ;;  %v1727_v42 = vpop.f32.mrb[11].mxu1  ;;  %v1318_v20 = vadd.f32 %v2173_v34, %v1285_v44 }
 0x329   : > { %v1304_v46 = vadd.f32 %v1245_v50, %v1042_v45  ;;  %v1607_v53 = vmul.f32 -1.442695, %v1303_v51 }
 0x32a   : > { %1844 = vpow2.f32 %v1605_v47  ;;  %v1606_v52 = vmul.f32 -1.442695, %v1290_v48 }
 0x32b   : > { %v1608_v54 = vmul.f32 -1.442695, %v1304_v46 }
 0x32c   : > { %1846 = vpow2.f32 %v1606_v52 }
 0x32d   : > { %1848 = vpow2.f32 %v1607_v53 }
 0x32e   : > { %1850 = vpow2.f32 %v1608_v54 }
 0x334   : > { %v1845_v55 = vpop.eup %1844 }
 0x335   : > { %v1297_v56 = vadd.f32 1.0, %v1845_v55 }
 0x336   : > { %v1847_v57 = vpop.eup %1846 }
 0x337   : > { %1852 = vrcp.f32 %v1297_v56  ;;  %v1298_v58 = vadd.f32 1.0, %v1847_v57  ;;  %v1849_v59 = vpop.eup %1848 }
 0x338   : > { %v1851_v61 = vpop.eup %1850  ;;  %v1311_v62 = vadd.f32 1.0, %v1849_v59 }
 0x339   : > { %1854 = vrcp.f32 %v1298_v58  ;;  %v1312_v2 = vadd.f32 1.0, %v1851_v61 }
 0x33a   : > { %1856 = vrcp.f32 %v1311_v62 }
 0x33b   : > { %1858 = vrcp.f32 %v1312_v2 }
 0x341   : > { %v1853_v11 = vpop.eup %1852 }
 0x342   : > { %v1319_v14 = vmul.f32 %v1853_v11, %v1317_v1 }
 0x343   : > { %v1855_v28 = vpop.eup %1854 }
 0x344   : > { %v1321_v3 = vadd.f32 %v1319_v14, %v1040_v0  ;;  %v1320_v5 = vmul.f32 %v1855_v28, %v1318_v20  ;;  %v1857_v7 = vpop.eup %1856 }
 0x345   : > { %v1859_v8 = vpop.eup %1858  ;;  %v1325_v9 = vsub.f32 1.0, %v1857_v7  ;;  %v1329_v35 = vmul.f32 %v1857_v7, %v2263_v24 }
 0x346   : > { %1860 = vtanh.f32 %v1321_v3  ;;  %v1322_v6 = vadd.f32 %v1320_v5, %v1043_v16  ;;  %v1326_v34 = vsub.f32 1.0, %v1859_v8  ;;  %v1330_v18 = vmul.f32 %v1859_v8, %v2266_v25 }
 0x348   : > { %1862 = vtanh.f32 %v1322_v6 }
 0x350   : > { %v1861_v10 = vpop.eup %1860 }
 0x351   : > { %v1327_v12 = vmul.f32 %v1861_v10, %v1325_v9 }
 0x352   : > { %v1863_v13 = vpop.eup %1862 }
 0x353   : > { %v1331_v15 = vadd.f32 %v1329_v35, %v1327_v12  ;;  %v1328_v17 = vmul.f32 %v1863_v13, %v1326_v34 }
 0x355   : > { %v1348_v21 = vsub.f32 %v1331_v15, %v2263_v24  ;;  %v1332_v23 = vadd.f32 %v1330_v18, %v1328_v17 }
 0x357   : > { %v1351_v26 = vmul.f32 %v1350_v19, %v1348_v21  ;;  %v1637_v29 = vpack.c.bf16 %v1332_v23, %v1331_v15  ;;  %v1349_v4 = vsub.f32 %v1332_v23, %v2266_v25 }
 0x359   : > { %v1353_v30 = vadd.f32 %v1351_v26, %v2263_v24  ;;  %1640 = vst [vmem:[%s1953_s7 + $0x10] sm:$0xff] %v1637_v29   ;;  %v1352_v31 = vmul.f32 %v1350_v19, %v1349_v4 }
 0x35b   : > { %1355 = vst [vmem:[#allocation2] sm:$0xff] %v1353_v30  ;;  %1359 = vst [vmem:[%s2310_s6] sm:$0xff] %v1353_v30  ;;  %v1354_v32 = vadd.f32 %v1352_v31, %v2266_v25 }
 0x35d   : > { %1356 = vst [vmem:[#allocation2 + $0x8] sm:$0xff] %v1354_v32  ;;  %1360 = vst [vmem:[%s2310_s6 + $0x8] sm:$0xff] %v1354_v32 }
 0x35e PF: > { %s17_s23 = sadd.s32 1, %s1886_s23   ;;  %s2311_s21 = smov %s1882_s22 }
 0x35f   : > { %p14_p8 = scmp.ge.s32.totalorder %s17_s23, 5   ;;  %s2312_s22 = smov %s2314_s24 }
 0x361   :  { %16 = sbr.rel (!%p14_p8) target bundleno = 2 (0x2), region = 93 }

</bundles_post_ra>
